<compile_context>
chip_gen: v5e
topology: v5e:2x2
jax: 0.10.0
libtpu: 0.0.40
codegen_flags: <defaults>
</compile_context>

<pallas_src>
import functools

import jax
import jax.numpy as jnp
from jax import lax
from jax.experimental import pallas as pl
from jax.experimental.pallas import tpu as pltpu

_LANE = 128
_SUBLANE = 8


def _dist_loss_kernel(x_ref, y_ref, xx_ref, yy_ref, dd_ref, xy_ref, *,
                      f, tile, nk, needs_mask):
    """Accumulate per-F-chunk partial sums into the c-th output slice."""
    c = pl.program_id(0)      # core-parallel F chunk
    k = pl.program_id(1)      # F-reduction step within the chunk

    @pl.when(k == 0)
    def _init():
        xx_ref[...] = jnp.zeros_like(xx_ref)
        yy_ref[...] = jnp.zeros_like(yy_ref)
        dd_ref[...] = jnp.zeros_like(dd_ref)
        xy_ref[...] = jnp.zeros_like(xy_ref)

    x = x_ref[...]                               # (B, TILE_F), native dtype
    y = y_ref[...]

    if needs_mask:
        # Ragged / duplicated tail tile: zero lanes past the true feature
        # count F. Zeros are exact (contribute nothing to any partial sum).
        start = (c * nk + k) * tile
        lane = lax.broadcasted_iota(jnp.int32, x.shape, 1)
        valid = (lane + start) < f
        x = jnp.where(valid, x, jnp.zeros_like(x))
        y = jnp.where(valid, y, jnp.zeros_like(y))

    # f32 math for the elementwise paths (no-op for f32 inputs).
    xf = x.astype(jnp.float32)
    yf = y.astype(jnp.float32)
    diff = xf - yf

    xx_ref[...] += jnp.sum(xf * xf, axis=-1, keepdims=True)[None]
    yy_ref[...] += jnp.sum(yf * yf, axis=-1, keepdims=True)[None]
    dd_ref[...] += jnp.sum(diff * diff, axis=-1, keepdims=True)[None]

    # Gram block on the MXU: native-dtype operands (bf16 fed directly),
    # contraction on the lane dims (no materialized y.T), f32 accumulation.
    xy_ref[...] += lax.dot_general(
        x, y,
        dimension_numbers=(((1,), (1,)), ((), ())),
        preferred_element_type=jnp.float32,
    )[None]


def dist_loss(output, target, weight=0.1, distance_metric=2,
              self_weight=1, other_weight=1, max_tile_f=64 * 1024):
    """JAX/Pallas equivalent of DistLoss.forward (p=2 only). Returns a scalar."""
    assert output.shape == target.shape, (
        "Output and target must have the same shape! {} != {}".format(
            output.shape, target.shape))
    assert distance_metric == 2, "Only p=2 (Euclidean) distance implemented."
    # TODO(synk): general p-norms (distance_metric != 2) are not implemented.

    b = output.shape[0]
    x = output.reshape(b, -1)                     # native dtype, no pad copy
    y = target.reshape(b, -1)
    if y.dtype != x.dtype:
        y = y.astype(x.dtype)
    f = x.shape[1]
    itemsize = jnp.dtype(x.dtype).itemsize

    # ---- Feature-tile selection from a per-generation VMEM budget ----------
    # Cost per lane of tile:
    #   2 inputs x 2 pipeline buffers x B_pad x itemsize      (DMA buffers)
    # + ~5 live f32 intermediates     x B_pad x 4 bytes        (kernel body)
    try:
        vmem_cap = pltpu.get_tpu_info().vmem_capacity_bytes
    except Exception:  # emulator / unknown chip
        vmem_cap = 64 << 20
    budget = min(int(vmem_cap * 0.70), 96 << 20)  # ~45MiB v7x, ~90MiB v5e/v6e
    b_pad = -(-b // _SUBLANE) * _SUBLANE
    per_lane_bytes = b_pad * (2 * 2 * itemsize + 5 * 4)
    tile = (budget // per_lane_bytes) // _LANE * _LANE
    tile = max(_LANE, min(tile, int(max_tile_f)))
    if tile >= f:
        tile = f          # whole feature axis as one full-dim block

    num_tiles = -(-f // tile)
    nc = 2 if num_tiles >= 2 else 1               # 2-way core-parallel F split
    nk = -(-num_tiles // nc)
    needs_mask = (nc * nk * tile != f)            # ragged tail / dup tile
    last_tile = num_tiles - 1

    def in_index_map(c, k):
        # Clamp so the DMA never walks past the last (possibly partial) block;
        # clamped duplicate tiles are fully masked to zero inside the kernel.
        return 0, jnp.minimum(c * nk + k, last_tile)

    acc_index_map = lambda c, k: (c, 0, 0)

    kernel = functools.partial(
        _dist_loss_kernel, f=f, tile=tile, nk=nk, needs_mask=needs_mask)

    flops = 2 * b * b * f + 6 * b * f
    bytes_accessed = 2 * b * f * itemsize + nc * (3 * b + b * b) * 4

    xx, yy, dd, xy = pl.pallas_call(
        kernel,
        out_shape=(
            jax.ShapeDtypeStruct((nc, b, 1), jnp.float32),   # sum x^2
            jax.ShapeDtypeStruct((nc, b, 1), jnp.float32),   # sum y^2
            jax.ShapeDtypeStruct((nc, b, 1), jnp.float32),   # sum (x-y)^2
            jax.ShapeDtypeStruct((nc, b, b), jnp.float32),   # x.y gram
        ),
        grid_spec=pltpu.PrefetchScalarGridSpec(
            num_scalar_prefetch=0,
            grid=(nc, nk),
            in_specs=[
                pl.BlockSpec((b, tile), in_index_map),
                pl.BlockSpec((b, tile), in_index_map),
            ],
            out_specs=[
                pl.BlockSpec((1, b, 1), acc_index_map),
                pl.BlockSpec((1, b, 1), acc_index_map),
                pl.BlockSpec((1, b, 1), acc_index_map),
                pl.BlockSpec((1, b, b), acc_index_map),
            ],
        ),
        compiler_params=pltpu.CompilerParams(
            # F-reduction axis is "arbitrary"; the leading 2-way chunk split is
            # independent ("parallel") so multi-TC chips (v7x) shard it.
            dimension_semantics=("parallel", "arbitrary"),
            vmem_limit_bytes=budget,
        ),
        cost_estimate=pl.CostEstimate(
            flops=flops, transcendentals=0, bytes_accessed=bytes_accessed),
    )(x, y)

    # ---- Tiny JAX epilogue: combine chunk partials, sqrt, weighted sum -----
    xx = jnp.sum(xx, axis=0)                      # (B, 1)
    yy = jnp.sum(yy, axis=0)                      # (B, 1)
    dd = jnp.sum(dd, axis=0)                      # (B, 1)
    xy = jnp.sum(xy, axis=0)                      # (B, B)

    sq = xx + yy.T - 2.0 * xy                     # ||x_i - y_n||^2, off-diag
    is_diag = jnp.eye(b, dtype=bool)
    sq = jnp.where(is_diag, dd, sq)               # exact, cancellation-free diag
    d = jnp.sqrt(jnp.maximum(sq, 0.0))            # pairwise L2 distances

    coeff = jnp.where(is_diag,
                      -jnp.asarray(self_weight, jnp.float32),
                      jnp.asarray(other_weight, jnp.float32))
    return jnp.sum(coeff * d) / b * weight


def _dist_loss_ref(output, target, weight=0.1, self_weight=1, other_weight=1):
    """Pure-JAX reference mirroring the PyTorch double loop."""
    b = output.shape[0]
    x = output.reshape(b, -1).astype(jnp.float32)
    y = target.reshape(b, -1).astype(jnp.float32)
    d_self = 0.0
    d_other = 0.0
    for i in range(b):
        for n in range(b):
            dist = jnp.sqrt(jnp.sum((x[i] - y[n]) ** 2))
            if i == n:
                d_self = d_self - dist
            else:
                d_other = d_other + dist
    return (d_self * self_weight + d_other * other_weight) / b * weight


if __name__ == "__main__":
    key = jax.random.PRNGKey(0)
    k1, k2, k3, k4, k5, k6 = jax.random.split(key, 6)

    # Case 1: nominal NCHW activations, F = 4*16*16 = 1024 (single full tile).
    B, C, H, W = 2, 4, 16, 16
    out1 = jax.random.normal(k1, (B, C, H, W), dtype=jnp.float32)
    tgt1 = jax.random.normal(k2, (B, C, H, W), dtype=jnp.float32)
    loss1 = jax.block_until_ready(dist_loss(out1, tgt1))
    ref1 = _dist_loss_ref(out1, tgt1)
    assert jnp.allclose(loss1, ref1, rtol=1e-3, atol=1e-4), (loss1, ref1)

    # Case 2: ragged F (3*7*9 = 189) with a forced small tile: exercises the
    # in-kernel lane masking of the partial tail tile and the 2-way F split.
    out2 = jax.random.normal(k3, (2, 3, 7, 9), dtype=jnp.float32)
    tgt2 = jax.random.normal(k4, (2, 3, 7, 9), dtype=jnp.float32)
    loss2 = jax.block_until_ready(dist_loss(out2, tgt2, max_tile_f=128))
    ref2 = _dist_loss_ref(out2, tgt2)
    assert jnp.allclose(loss2, ref2, rtol=1e-3, atol=1e-4), (loss2, ref2)

    # Case 3: odd tile count (F = 6*8*8 = 384, 3 tiles of 128): exercises the
    # clamped, fully-masked duplicate tile on the 2-way split.
    out3 = jax.random.normal(k5, (2, 6, 8, 8), dtype=jnp.float32)
    tgt3 = jax.random.normal(k6, (2, 6, 8, 8), dtype=jnp.float32)
    loss3 = jax.block_until_ready(dist_loss(out3, tgt3, max_tile_f=128))
    ref3 = _dist_loss_ref(out3, tgt3)
    assert jnp.allclose(loss3, ref3, rtol=1e-3, atol=1e-4), (loss3, ref3)

    print("KERNEL_OK")
</pallas_src>

<mosaic_0001>
module attributes {stable_mosaic.version = 11 : i64} {
  func.func @_dist_loss_kernel(%arg0: i32, %arg1: i32, %arg2: memref<2x1024xf32, #tpu.memory_space<vmem>>, %arg3: memref<2x1024xf32, #tpu.memory_space<vmem>>, %arg4: memref<1x2x1xf32, #tpu.memory_space<vmem>>, %arg5: memref<1x2x1xf32, #tpu.memory_space<vmem>>, %arg6: memref<1x2x1xf32, #tpu.memory_space<vmem>>, %arg7: memref<1x2x2xf32, #tpu.memory_space<vmem>>) attributes {dimension_semantics = [#tpu.dimension_semantics<parallel>, #tpu.dimension_semantics<arbitrary>], iteration_bounds = array<i64: 1, 1>, scalar_prefetch = 0 : i64, scratch_operands = 0 : i64, tpu.core_type = #tpu.core_type<tc>, window_params = [{transform_indices = @transform_0, window_bounds = array<i64: 2, 1024>}, {transform_indices = @transform_1, window_bounds = array<i64: 2, 1024>}, {transform_indices = @transform_2, window_bounds = array<i64: 1, 2, 1>}, {transform_indices = @transform_3, window_bounds = array<i64: 1, 2, 1>}, {transform_indices = @transform_4, window_bounds = array<i64: 1, 2, 1>}, {transform_indices = @transform_5, window_bounds = array<i64: 1, 2, 2>}]} {
    %c0_i32 = arith.constant 0 : i32
    %0 = arith.cmpi eq, %arg1, %c0_i32 : i32
    %1 = arith.extui %0 : i1 to i32
    %c0_i32_0 = arith.constant 0 : i32
    %2 = arith.cmpi ne, %1, %c0_i32_0 : i32
    scf.if %2 {
      %cst_31 = arith.constant 0.000000e+00 : f32
      %32 = vector.broadcast %cst_31 : f32 to vector<1x2x1xf32>
      %c0_32 = arith.constant 0 : index
      %c0_33 = arith.constant 0 : index
      %c0_34 = arith.constant 0 : index
      %33 = vector.load %arg4[%c0_32, %c0_33, %c0_34] : memref<1x2x1xf32, #tpu.memory_space<vmem>>, vector<1x2x1xf32>
      tpu.vector_store %arg4[%c0_32, %c0_33, %c0_34], %32 {strides = array<i32>} : memref<1x2x1xf32, #tpu.memory_space<vmem>>, vector<1x2x1xf32>,
      %cst_35 = arith.constant 0.000000e+00 : f32
      %34 = vector.broadcast %cst_35 : f32 to vector<1x2x1xf32>
      %c0_36 = arith.constant 0 : index
      %c0_37 = arith.constant 0 : index
      %c0_38 = arith.constant 0 : index
      %35 = vector.load %arg5[%c0_36, %c0_37, %c0_38] : memref<1x2x1xf32, #tpu.memory_space<vmem>>, vector<1x2x1xf32>
      tpu.vector_store %arg5[%c0_36, %c0_37, %c0_38], %34 {strides = array<i32>} : memref<1x2x1xf32, #tpu.memory_space<vmem>>, vector<1x2x1xf32>,
      %cst_39 = arith.constant 0.000000e+00 : f32
      %36 = vector.broadcast %cst_39 : f32 to vector<1x2x1xf32>
      %c0_40 = arith.constant 0 : index
      %c0_41 = arith.constant 0 : index
      %c0_42 = arith.constant 0 : index
      %37 = vector.load %arg6[%c0_40, %c0_41, %c0_42] : memref<1x2x1xf32, #tpu.memory_space<vmem>>, vector<1x2x1xf32>
      tpu.vector_store %arg6[%c0_40, %c0_41, %c0_42], %36 {strides = array<i32>} : memref<1x2x1xf32, #tpu.memory_space<vmem>>, vector<1x2x1xf32>,
      %cst_43 = arith.constant 0.000000e+00 : f32
      %38 = vector.broadcast %cst_43 : f32 to vector<1x2x2xf32>
      %c0_44 = arith.constant 0 : index
      %c0_45 = arith.constant 0 : index
      %c0_46 = arith.constant 0 : index
      %39 = vector.load %arg7[%c0_44, %c0_45, %c0_46] : memref<1x2x2xf32, #tpu.memory_space<vmem>>, vector<1x2x2xf32>
      tpu.vector_store %arg7[%c0_44, %c0_45, %c0_46], %38 {strides = array<i32>} : memref<1x2x2xf32, #tpu.memory_space<vmem>>, vector<1x2x2xf32>,
    } else {
    }
    %c0 = arith.constant 0 : index
    %c0_1 = arith.constant 0 : index
    %3 = vector.load %arg2[%c0, %c0_1] : memref<2x1024xf32, #tpu.memory_space<vmem>>, vector<2x1024xf32>
    %c0_2 = arith.constant 0 : index
    %c0_3 = arith.constant 0 : index
    %4 = vector.load %arg3[%c0_2, %c0_3] : memref<2x1024xf32, #tpu.memory_space<vmem>>, vector<2x1024xf32>
    %5 = arith.subf %3, %4 : vector<2x1024xf32>
    %c0_4 = arith.constant 0 : index
    %c0_5 = arith.constant 0 : index
    %c0_6 = arith.constant 0 : index
    %6 = vector.load %arg4[%c0_4, %c0_5, %c0_6] : memref<1x2x1xf32, #tpu.memory_space<vmem>>, vector<1x2x1xf32>
    %7 = arith.mulf %3, %3 : vector<2x1024xf32>
    %cst = arith.constant dense<0.000000e+00> : vector<2xf32>
    %8 = vector.multi_reduction <add>, %7, %cst [1] : vector<2x1024xf32> to vector<2xf32>
    %9 = vector.shape_cast %8 : vector<2xf32> to vector<2x1xf32>
    %10 = vector.shape_cast %9 : vector<2x1xf32> to vector<1x2x1xf32>
    %11 = arith.addf %6, %10 : vector<1x2x1xf32>
    %c0_7 = arith.constant 0 : index
    %c0_8 = arith.constant 0 : index
    %c0_9 = arith.constant 0 : index
    %12 = vector.load %arg4[%c0_7, %c0_8, %c0_9] : memref<1x2x1xf32, #tpu.memory_space<vmem>>, vector<1x2x1xf32>
    tpu.vector_store %arg4[%c0_7, %c0_8, %c0_9], %11 {strides = array<i32>} : memref<1x2x1xf32, #tpu.memory_space<vmem>>, vector<1x2x1xf32>,
    %c0_10 = arith.constant 0 : index
    %c0_11 = arith.constant 0 : index
    %c0_12 = arith.constant 0 : index
    %13 = vector.load %arg5[%c0_10, %c0_11, %c0_12] : memref<1x2x1xf32, #tpu.memory_space<vmem>>, vector<1x2x1xf32>
    %14 = arith.mulf %4, %4 : vector<2x1024xf32>
    %cst_13 = arith.constant dense<0.000000e+00> : vector<2xf32>
    %15 = vector.multi_reduction <add>, %14, %cst_13 [1] : vector<2x1024xf32> to vector<2xf32>
    %16 = vector.shape_cast %15 : vector<2xf32> to vector<2x1xf32>
    %17 = vector.shape_cast %16 : vector<2x1xf32> to vector<1x2x1xf32>
    %18 = arith.addf %13, %17 : vector<1x2x1xf32>
    %c0_14 = arith.constant 0 : index
    %c0_15 = arith.constant 0 : index
    %c0_16 = arith.constant 0 : index
    %19 = vector.load %arg5[%c0_14, %c0_15, %c0_16] : memref<1x2x1xf32, #tpu.memory_space<vmem>>, vector<1x2x1xf32>
    tpu.vector_store %arg5[%c0_14, %c0_15, %c0_16], %18 {strides = array<i32>} : memref<1x2x1xf32, #tpu.memory_space<vmem>>, vector<1x2x1xf32>,
    %c0_17 = arith.constant 0 : index
    %c0_18 = arith.constant 0 : index
    %c0_19 = arith.constant 0 : index
    %20 = vector.load %arg6[%c0_17, %c0_18, %c0_19] : memref<1x2x1xf32, #tpu.memory_space<vmem>>, vector<1x2x1xf32>
    %21 = arith.mulf %5, %5 : vector<2x1024xf32>
    %cst_20 = arith.constant dense<0.000000e+00> : vector<2xf32>
    %22 = vector.multi_reduction <add>, %21, %cst_20 [1] : vector<2x1024xf32> to vector<2xf32>
    %23 = vector.shape_cast %22 : vector<2xf32> to vector<2x1xf32>
    %24 = vector.shape_cast %23 : vector<2x1xf32> to vector<1x2x1xf32>
    %25 = arith.addf %20, %24 : vector<1x2x1xf32>
    %c0_21 = arith.constant 0 : index
    %c0_22 = arith.constant 0 : index
    %c0_23 = arith.constant 0 : index
    %26 = vector.load %arg6[%c0_21, %c0_22, %c0_23] : memref<1x2x1xf32, #tpu.memory_space<vmem>>, vector<1x2x1xf32>
    tpu.vector_store %arg6[%c0_21, %c0_22, %c0_23], %25 {strides = array<i32>} : memref<1x2x1xf32, #tpu.memory_space<vmem>>, vector<1x2x1xf32>,
    %c0_24 = arith.constant 0 : index
    %c0_25 = arith.constant 0 : index
    %c0_26 = arith.constant 0 : index
    %27 = vector.load %arg7[%c0_24, %c0_25, %c0_26] : memref<1x2x2xf32, #tpu.memory_space<vmem>>, vector<1x2x2xf32>
    %cst_27 = arith.constant dense<0.000000e+00> : vector<2x2xf32>
    %28 = tpu.matmul %3, %4, %cst_27 {dimension_numbers = #tpu.dot_dimension_numbers<[1], [1], [0], [0], [0, 0, 1, 0], [], []>} : vector<2x1024xf32>, vector<2x1024xf32>, vector<2x2xf32> -> vector<2x2xf32>
    %29 = vector.shape_cast %28 : vector<2x2xf32> to vector<1x2x2xf32>
    %30 = arith.addf %27, %29 : vector<1x2x2xf32>
    %c0_28 = arith.constant 0 : index
    %c0_29 = arith.constant 0 : index
    %c0_30 = arith.constant 0 : index
    %31 = vector.load %arg7[%c0_28, %c0_29, %c0_30] : memref<1x2x2xf32, #tpu.memory_space<vmem>>, vector<1x2x2xf32>
    tpu.vector_store %arg7[%c0_28, %c0_29, %c0_30], %30 {strides = array<i32>} : memref<1x2x2xf32, #tpu.memory_space<vmem>>, vector<1x2x2xf32>,
    return
  }
  func.func @transform_0(%arg0: i32, %arg1: i32) -> (i32, i32) {
    %c1_i32 = arith.constant 1 : i32
    %0 = arith.muli %arg0, %c1_i32 : i32
    %1 = arith.addi %0, %arg1 : i32
    %c0_i32 = arith.constant 0 : i32
    %2 = arith.minsi %1, %c0_i32 : i32
    %c0_i32_0 = arith.constant 0 : i32
    %c0_i32_1 = arith.constant 0 : i32
    return %c0_i32_0, %2 : i32, i32
  }
  func.func @transform_1(%arg0: i32, %arg1: i32) -> (i32, i32) {
    %c1_i32 = arith.constant 1 : i32
    %0 = arith.muli %arg0, %c1_i32 : i32
    %1 = arith.addi %0, %arg1 : i32
    %c0_i32 = arith.constant 0 : i32
    %2 = arith.minsi %1, %c0_i32 : i32
    %c0_i32_0 = arith.constant 0 : i32
    %c0_i32_1 = arith.constant 0 : i32
    return %c0_i32_0, %2 : i32, i32
  }
  func.func @transform_2(%arg0: i32, %arg1: i32) -> (i32, i32, i32) {
    %c0_i32 = arith.constant 0 : i32
    %c0_i32_0 = arith.constant 0 : i32
    %c0_i32_1 = arith.constant 0 : i32
    return %arg0, %c0_i32, %c0_i32_0 : i32, i32, i32
  }
  func.func @transform_3(%arg0: i32, %arg1: i32) -> (i32, i32, i32) {
    %c0_i32 = arith.constant 0 : i32
    %c0_i32_0 = arith.constant 0 : i32
    %c0_i32_1 = arith.constant 0 : i32
    return %arg0, %c0_i32, %c0_i32_0 : i32, i32, i32
  }
  func.func @transform_4(%arg0: i32, %arg1: i32) -> (i32, i32, i32) {
    %c0_i32 = arith.constant 0 : i32
    %c0_i32_0 = arith.constant 0 : i32
    %c0_i32_1 = arith.constant 0 : i32
    return %arg0, %c0_i32, %c0_i32_0 : i32, i32, i32
  }
  func.func @transform_5(%arg0: i32, %arg1: i32) -> (i32, i32, i32) {
    %c0_i32 = arith.constant 0 : i32
    %c0_i32_0 = arith.constant 0 : i32
    %c0_i32_1 = arith.constant 0 : i32
    return %arg0, %c0_i32, %c0_i32_0 : i32, i32, i32
  }
}

</mosaic_0001>

<bundles_post_ra>
// kernel: tpu_custom_call.1
= control target key start
LH: loop header
LB: loop body
LE: loop exit
PB: predicated region body
PF: predicated region fallthrough
CT: control target
= control target key end

     0   :  { %11 = vsyncpa [#allocation3], 0  ;;  %s647_s0 = inlined_call_operand.hbm [shape: f32[2,1024], index: 0, kind: input, shape index: {}]   ;;  %s648_s1 = inlined_call_operand.hbm [shape: f32[2,1024], index: 1, kind: input, shape index: {}]   ;;  %s649_s2 = inlined_call_operand.vmem [shape: f32[1,2,1], index: 2, kind: output, shape index: {0}]   ;;  %s650_s3 = inlined_call_operand.vmem [shape: f32[1,2,1], index: 3, kind: output, shape index: {1}]   ;;  %s651_s4 = inlined_call_operand.vmem [shape: f32[1,2,1], index: 4, kind: output, shape index: {2}]   ;;  %s652_s5 = inlined_call_operand.hbm [shape: f32[1,2,2], index: 5, kind: output, shape index: {3}]  }
   0x1   :  { %12 = vsyncpa [#allocation6], 0 }
   0x2   :  { %13 = vsyncpa [#allocation4], 0  ;;  %s25_s20 = sshll.u32 %s647_s0, 4  ;;  %s533_s21 = smov [#allocation2]   ;;  %s26_s20 = int_to_ptr.hbm [resolvable:$true] %s25_s20 }
   0x3   :  { %s27_s22 = sshll.u32 %s533_s21, 4  ;;  %s42_s25 = sshll.u32 %s648_s1, 4  ;;  %s28_s22 = int_to_ptr.vmem [resolvable:$true] %s27_s22  ;;  %s43_s25 = int_to_ptr.hbm [resolvable:$true] %s42_s25 }
   0x4   :  { %30 = dma.hbm_to_vmem [thread:$0]  %s26_s20, 256, %s28_s22, [#allocation3]  }
   0x5   :  { %s534_s26 = smov [#allocation5]  }
   0x6   :  { %s44_s27 = sshll.u32 %s534_s26, 4  ;;  %s45_s27 = int_to_ptr.vmem [resolvable:$true] %s44_s27 }
   0x7   :  { %47 = dma.hbm_to_vmem [thread:$0]  %s43_s25, 256, %s45_s27, [#allocation6]  }
   0x8   :  { %527 = dma.done.wait [#allocation3], 256  }
   0x9   :  { %528 = vsyncadd [#allocation3], 4294967040 }
   0xa   :  { %529 = dma.done.wait [#allocation6], 256  }
   0xb   :  { %530 = vsyncadd [#allocation6], 4294967040  ;;  %v74_v0 = vld [vmem:[#allocation2] sm:$0xff]  ;;  %v75_v1 = vld [vmem:[#allocation2 + $0x8] sm:$0xff]  ;;  %vm104_vm0 = vcmask 1041408   ;;  %vm68_vm1 = vcmask 1024  }
   0xc   :  { %v81_v2 = vmul.f32 %v74_v0, %v74_v0  ;;  %v82_v3 = vmul.f32 %v75_v1, %v75_v1  ;;  %v573_v4 = vld [vmem:[#allocation5] sm:$0xff]  ;;  %v577_v6 = vld [vmem:[#allocation5 + $0x8] sm:$0xff]  ;;  %vm72_vm2 = vcmask 9216  }
   0xd   :  { %v126_v5 = vmul.f32 %v573_v4, %v573_v4  ;;  %v127_v11 = vmul.f32 %v577_v6, %v577_v6  ;;  %v78_v13 = vsub.f32 %v74_v0, %v573_v4  ;;  %v79_v17 = vsub.f32 %v75_v1, %v577_v6 }
   0xe   :  { %85 = vst [vmem:[#allocation1] ss:$4 sm:$0xff] %v81_v2 }
   0xf   :  { %87 = vst [vmem:[#allocation1 + $0x20] ss:$4 sm:$0xff] %v82_v3  ;;  %v169_v18 = vmul.f32 %v78_v13, %v78_v13  ;;  %v170_v23 = vmul.f32 %v79_v17, %v79_v17 }
  0x15   :  { %v88_v7 = vld.sshfl [vmem:[#allocation1] sm:$0xff pattern:$0x73625140]  ;;  %v89_v8 = vld.sshfl [vmem:[#allocation1 + $0x8] sm:$0xff pattern:$0x73625140] }
  0x16   :  { %v90_v9 = vld.sshfl [vmem:[#allocation1 + $0x10] sm:$0xff pattern:$0x73625140]  ;;  %v91_v10 = vld.sshfl [vmem:[#allocation1 + $0x18] sm:$0xff pattern:$0x73625140] }
  0x17   :  { %130 = vst [vmem:[#allocation1] ss:$4 sm:$0xff] %v126_v5  ;;  %v92_v12 = vld.sshfl [vmem:[#allocation1 + $0x20] sm:$0xff pattern:$0x73625140]  ;;  %v105_v28 = vsel %vm104_vm0, %v88_v7, 0.0 }
  0x18   :  { %v93_v14 = vld.sshfl [vmem:[#allocation1 + $0x28] sm:$0xff pattern:$0x73625140]  ;;  %v94_v15 = vld.sshfl [vmem:[#allocation1 + $0x30] sm:$0xff pattern:$0x73625140] }
  0x19   :  { %v95_v16 = vld.sshfl [vmem:[#allocation1 + $0x38] sm:$0xff pattern:$0x73625140]  ;;  %v106_v29 = vsel %vm104_vm0, %v89_v8, 0.0  ;;  %v108_v31 = vsel %vm104_vm0, %v90_v9, 0.0  ;;  %v110_v37 = vsel %vm104_vm0, %v91_v10, 0.0 }
  0x1a   :  { %132 = vst [vmem:[#allocation1 + $0x20] ss:$4 sm:$0xff] %v127_v11  ;;  %v107_v30 = vadd.f32 %v106_v29, %v105_v28  ;;  %v112_v38 = vsel %vm104_vm0, %v92_v12, 0.0  ;;  %v114_v39 = vsel %vm104_vm0, %v93_v14, 0.0  ;;  %v116_v46 = vsel %vm104_vm0, %v94_v15, 0.0 }
  0x1b   :  { %v118_v49 = vsel %vm104_vm0, %v95_v16, 0.0 }
  0x1c   :  { %v109_v34 = vadd.f32 %v108_v31, %v107_v30 }
  0x1e   :  { %v133_v19 = vld.sshfl [vmem:[#allocation1] sm:$0xff pattern:$0x73625140]  ;;  %v134_v20 = vld.sshfl [vmem:[#allocation1 + $0x8] sm:$0xff pattern:$0x73625140]  ;;  %v111_v42 = vadd.f32 %v110_v37, %v109_v34 }
  0x1f   :  { %v135_v21 = vld.sshfl [vmem:[#allocation1 + $0x10] sm:$0xff pattern:$0x73625140]  ;;  %v136_v22 = vld.sshfl [vmem:[#allocation1 + $0x18] sm:$0xff pattern:$0x73625140] }
  0x20   :  { %173 = vst [vmem:[#allocation1] ss:$4 sm:$0xff] %v169_v18  ;;  %v113_v45 = vadd.f32 %v112_v38, %v111_v42  ;;  %v149_v47 = vsel %vm104_vm0, %v133_v19, 0.0  ;;  %v150_v48 = vsel %vm104_vm0, %v134_v20, 0.0  ;;  %v152_v51 = vsel %vm104_vm0, %v135_v21, 0.0 }
  0x21   :  { %v137_v24 = vld.sshfl [vmem:[#allocation1 + $0x20] sm:$0xff pattern:$0x73625140]  ;;  %v138_v25 = vld.sshfl [vmem:[#allocation1 + $0x28] sm:$0xff pattern:$0x73625140]  ;;  %v151_v50 = vadd.f32 %v150_v48, %v149_v47 }
  0x22   :  { %v139_v26 = vld.sshfl [vmem:[#allocation1 + $0x30] sm:$0xff pattern:$0x73625140]  ;;  %v140_v27 = vld.sshfl [vmem:[#allocation1 + $0x38] sm:$0xff pattern:$0x73625140]  ;;  %v115_v53 = vadd.f32 %v114_v39, %v113_v45 }
  0x23   :  { %175 = vst [vmem:[#allocation1 + $0x20] ss:$4 sm:$0xff] %v170_v23  ;;  %v154_v52 = vsel %vm104_vm0, %v136_v22, 0.0  ;;  %v156_v54 = vsel %vm104_vm0, %v137_v24, 0.0  ;;  %v158_v55 = vsel %vm104_vm0, %v138_v25, 0.0  ;;  %v160_v56 = vsel %vm104_vm0, %v139_v26, 0.0 }
  0x24   :  { %v153_v57 = vadd.f32 %v152_v51, %v151_v50  ;;  %v117_v63 = vadd.f32 %v116_v46, %v115_v53 }
  0x26   :  { %v155_v3 = vadd.f32 %v154_v52, %v153_v57  ;;  %v119_v5 = vadd.f32 %v118_v49, %v117_v63 }
  0x27   :  { %v176_v32 = vld.sshfl [vmem:[#allocation1] sm:$0xff pattern:$0x73625140]  ;;  %v177_v33 = vld.sshfl [vmem:[#allocation1 + $0x8] sm:$0xff pattern:$0x73625140] }
  0x28   :  { %v178_v35 = vld.sshfl [vmem:[#allocation1 + $0x10] sm:$0xff pattern:$0x73625140]  ;;  %v179_v36 = vld.sshfl [vmem:[#allocation1 + $0x18] sm:$0xff pattern:$0x73625140]  ;;  %v157_v12 = vadd.f32 %v156_v54, %v155_v3  ;;  %120 = vadd.xlane.f32.xlu0 %v119_v5 }
  0x29   :  { %214 = vst [vmem:[#allocation1] ss:$4 sm:$0xff] %v74_v0  ;;  %v192_v58 = vsel %vm104_vm0, %v176_v32, 0.0  ;;  %v193_v59 = vsel %vm104_vm0, %v177_v33, 0.0  ;;  %v195_v60 = vsel %vm104_vm0, %v178_v35, 0.0  ;;  %v197_v8 = vsel %vm104_vm0, %v179_v36, 0.0 }
  0x2a   :  { %v180_v40 = vld.sshfl [vmem:[#allocation1 + $0x20] sm:$0xff pattern:$0x73625140]  ;;  %v181_v41 = vld.sshfl [vmem:[#allocation1 + $0x28] sm:$0xff pattern:$0x73625140]  ;;  %v194_v0 = vadd.f32 %v193_v59, %v192_v58  ;;  %v159_v16 = vadd.f32 %v158_v55, %v157_v12 }
  0x2b   :  { %v182_v43 = vld.sshfl [vmem:[#allocation1 + $0x30] sm:$0xff pattern:$0x73625140]  ;;  %v183_v44 = vld.sshfl [vmem:[#allocation1 + $0x38] sm:$0xff pattern:$0x73625140] }
  0x2c   :  { %216 = vst [vmem:[#allocation1 + $0x20] ss:$4 sm:$0xff] %v75_v1  ;;  %v196_v7 = vadd.f32 %v195_v60, %v194_v0  ;;  %v199_v9 = vsel %vm104_vm0, %v180_v40, 0.0  ;;  %v201_v17 = vsel %vm104_vm0, %v181_v41, 0.0  ;;  %v161_v19 = vadd.f32 %v160_v56, %v159_v16 }
  0x2d   :  { %v203_v20 = vsel %vm104_vm0, %v182_v43, 0.0  ;;  %v205_v22 = vsel %vm104_vm0, %v183_v44, 0.0  ;;  %v535_v33 = vmov 0.0  }
  0x2e   :  { %v198_v15 = vadd.f32 %v197_v8, %v196_v7  ;;  %69 = vst.msk [vmem:[%s649_s2] sm:$0x3] %vm68_vm1, %v535_v33 }
  0x2f   :  { %70 = vst.msk [vmem:[%s650_s3] sm:$0x3] %vm68_vm1, %v535_v33 }
  0x30   :  { %v217_v61 = vld.sshfl [vmem:[#allocation1] sm:$0xff pattern:$0x73625140]  ;;  %v218_v62 = vld.sshfl [vmem:[#allocation1 + $0x8] sm:$0xff pattern:$0x73625140]  ;;  %v200_v18 = vadd.f32 %v199_v9, %v198_v15 }
  0x31   :  { %v219_v1 = vld.sshfl [vmem:[#allocation1 + $0x10] sm:$0xff pattern:$0x73625140]  ;;  %v220_v2 = vld.sshfl [vmem:[#allocation1 + $0x18] sm:$0xff pattern:$0x73625140] }
  0x32   :  { %235 = vst [vmem:[#allocation1] ss:$4 sm:$0xff] %v573_v4  ;;  %v162_v4 = vsel %vm104_vm0, %v140_v27, 0.0  ;;  %v202_v21 = vadd.f32 %v201_v17, %v200_v18 }
  0x33   :  { %v221_v10 = vld.sshfl [vmem:[#allocation1 + $0x20] sm:$0xff pattern:$0x73625140]  ;;  %v222_v11 = vld.sshfl [vmem:[#allocation1 + $0x28] sm:$0xff pattern:$0x73625140]  ;;  %v163_v25 = vadd.f32 %v162_v4, %v161_v19 }
  0x34   :  { %v223_v13 = vld.sshfl [vmem:[#allocation1 + $0x30] sm:$0xff pattern:$0x73625140]  ;;  %v224_v14 = vld.sshfl [vmem:[#allocation1 + $0x38] sm:$0xff pattern:$0x73625140] }
  0x35   :  { %237 = vst [vmem:[#allocation1 + $0x20] ss:$4 sm:$0xff] %v577_v6  ;;  %v204_v6 = vadd.f32 %v203_v20, %v202_v21  ;;  %164 = vadd.xlane.f32.xlu0 %v163_v25  ;;  %v80_v34 = vld [vmem:[%s649_s2] sm:$0x3] }
  0x36   :  { %71 = vst.msk [vmem:[%s651_s4] sm:$0x3] %vm68_vm1, %v535_v33  ;;  %v125_v37 = vld [vmem:[%s650_s3] sm:$0x3] }
  0x37   :  { %v206_v32 = vadd.f32 %v205_v22, %v204_v6  ;;  %73 = vst.msk [vmem:[#allocation7] sm:$0x3] %vm72_vm2, %v535_v33 }
  0x39   :  { %v240_v23 = vld.sshfl [vmem:[#allocation1 + $0x10] sm:$0xff pattern:$0x73625140]  ;;  %v238_v24 = vld.sshfl [vmem:[#allocation1] sm:$0xff pattern:$0x73625140]  ;;  %207 = vadd.xlane.f32.xlu1 %v206_v32 }
  0x3a   :  { %309 = vmatpush.xpose.msra.mxu2 %v240_v23  ;;  %269 = vmatpush.xpose.msra.mxu0 %v238_v24  ;;  %v239_v26 = vld.sshfl [vmem:[#allocation1 + $0x8] sm:$0xff pattern:$0x73625140]  ;;  %v241_v28 = vld.sshfl [vmem:[#allocation1 + $0x18] sm:$0xff pattern:$0x73625140] }
  0x3b   :  { %289 = vmatpush.xpose.msra.mxu1 %v239_v26  ;;  %329 = vmatpush.xpose.msra.mxu3 %v241_v28 }
  0x3c   :  { %v244_v29 = vld.sshfl [vmem:[#allocation1 + $0x30] sm:$0xff pattern:$0x73625140]  ;;  %v242_v30 = vld.sshfl [vmem:[#allocation1 + $0x20] sm:$0xff pattern:$0x73625140] }
  0x3d   :  { %310 = vmatmul.f32.vlgmr.msra.gmra.mxu2 %v219_v1  ;;  %270 = vmatmul.f32.vlgmr.msra.gmra.mxu0 %v217_v61  ;;  %v245_v27 = vld.sshfl [vmem:[#allocation1 + $0x38] sm:$0xff pattern:$0x73625140]  ;;  %v243_v31 = vld.sshfl [vmem:[#allocation1 + $0x28] sm:$0xff pattern:$0x73625140] }
  0x3e   :  { %389 = vmatpush.xpose.msrb.mxu2 %v244_v29  ;;  %290 = vmatmul.f32.vlgmr.msra.gmra.mxu1 %v218_v62  ;;  %v168_v40 = vld [vmem:[%s651_s4] sm:$0x3]  ;;  %v211_v56 = vld [vmem:[#allocation7] sm:$0x3] }
  0x3f   :  { %330 = vmatmul.f32.vlgmr.msra.gmra.mxu3 %v220_v2  ;;  %349 = vmatpush.xpose.msrb.mxu0 %v242_v30 }
  0x40   :  { %409 = vmatpush.xpose.msrb.mxu3 %v245_v27  ;;  %369 = vmatpush.xpose.msrb.mxu1 %v243_v31 }
  0x45   :  { %390 = vmatmul.f32.vlgmr.msrb.gmra.mxu2 %v223_v13  ;;  %350 = vmatmul.f32.vlgmr.msrb.gmra.mxu0 %v221_v10 }
  0x46   :  { %370 = vmatmul.f32.vlgmr.msrb.gmra.mxu1 %v222_v11 }
  0x47   :  { %410 = vmatmul.f32.vlgmr.msrb.gmra.mxu3 %v224_v14 }
  0x9b   :  { %v121_v35 = vpop.xlane.xlu0 %120 }
  0x9c   :  { %v122_v36 = vadd.f32 %v121_v35, %v80_v34 }
  0x9e   :  { %124 = vst.msk [vmem:[%s649_s2] sm:$0x3] %vm68_vm1, %v122_v36 }
  0xa8   :  { %v165_v38 = vpop.xlane.xlu0 %164 }
  0xa9   :  { %v166_v39 = vadd.f32 %v165_v38, %v125_v37 }
  0xab   :  { %167 = vst.msk [vmem:[%s650_s3] sm:$0x3] %vm68_vm1, %v166_v39  ;;  %s536_s3 = smov [#allocation7]  }
  0xac   :  { %v208_v41 = vpop.xlane.xlu1 %207  ;;  %s428_s18 = sshll.u32 %s536_s3, 4  ;;  %s429_s18 = int_to_ptr.vmem [resolvable:$true] %s428_s18 }
  0xad   :  { %v209_v42 = vadd.f32 %v208_v41, %v168_v40 }
  0xaf   :  { %210 = vst.msk [vmem:[%s651_s4] sm:$0x3] %vm68_vm1, %v209_v42  ;;  %s430_s4 = sshll.u32 %s652_s5, 4  ;;  %s431_s4 = int_to_ptr.hbm [resolvable:$true] %s430_s4 }
  0xba   :  { %v271_v43 = vpop.f32.mrf.mxu0 }
  0xbb   :  { %v291_v44 = vpop.f32.mrf.mxu1 }
  0xbc   :  { %v292_v45 = vadd.f32 %v291_v44, %v271_v43 }
  0xc0   :  { %v311_v46 = vpop.f32.mrf.mxu2 }
  0xc1   :  { %v312_v47 = vadd.f32 %v311_v46, %v292_v45 }
  0xc2   :  { %v331_v48 = vpop.f32.mrf.mxu3  ;;  %v351_v49 = vpop.f32.mrf.mxu0 }
  0xc3   :  { %v332_v50 = vadd.f32 %v331_v48, %v312_v47  ;;  %v371_v51 = vpop.f32.mrf.mxu1 }
  0xc5   :  { %v352_v52 = vadd.f32 %v351_v49, %v332_v50 }
  0xc7   :  { %v372_v53 = vadd.f32 %v371_v51, %v352_v52 }
  0xc8   :  { %v391_v54 = vpop.f32.mrf.mxu2 }
  0xc9   :  { %v392_v55 = vadd.f32 %v391_v54, %v372_v53 }
  0xca   :  { %v411_v57 = vpop.f32.mrf.mxu3 }
  0xcb   :  { %v412_v58 = vadd.f32 %v411_v57, %v392_v55 }
  0xcd   :  { %v414_v59 = vadd.f32 %v412_v58, %v211_v56 }
  0xcf   :  { %416 = vst.msk [vmem:[#allocation7] sm:$0x3] %vm72_vm2, %v414_v59 }
  0xd0   :  { %433 = dma.vmem_to_hbm [thread:$0]  %s429_s18, 32, %s431_s4, [#allocation4]  }
  0xd1   :  { %531 = dma.done.wait [#allocation4], 32  }
  0xd2   :  { %532 = vsyncadd [#allocation4], 4294967264 }
  0xd3   :  { %444 = vsyncpa [#allocation3], 1 }
  0xd4   :  { %445 = vsyncpa [#allocation6], 1 }
  0xd5   :  { %446 = vsyncpa [#allocation4], 1 }

</bundles_post_ra>
